<compile_context>
chip_gen: v5e
topology: v5e:2x2
jax: 0.10.0
libtpu: 0.0.40
codegen_flags: <defaults>
</compile_context>

<pallas_src>
import functools

import jax
import jax.numpy as jnp
from jax import lax
from jax.experimental import pallas as pl
from jax.experimental.pallas import tpu as pltpu

_SUBLANE = 8        # f32 sublane multiple (second-to-last dim)
_BATCH_TILE = 256   # M tile for large-batch serving (v6e/v7x MXU is 2x256^2)


def _round_up(x: int, m: int) -> int:
    return (x + m - 1) // m * m


def _head_kernel(h_ref, w_ref, b_ref, o_ref):
    # Dropout(p=0.3) in eval mode == identity: no masking / scaling here.
    # In-kernel bf16 cast of the f32 activation (VPU; hides under DMA/MXU).
    h = h_ref[...].astype(jnp.bfloat16)                  # [Bm, H]  bf16
    w = w_ref[...]                                       # [C8, H]  bf16
    # Contract on H (last dim of BOTH operands) == x @ w.T without an explicit
    # transpose op; bf16 x bf16 -> f32 accumulation on the MXU.
    acc = lax.dot_general(
        h, w,
        dimension_numbers=(((1,), (1,)), ((), ())),
        preferred_element_type=jnp.float32)              # [Bm, C8] f32
    # f32 epilogue (bias broadcast [1, C8]); padded class lanes carry zeros.
    o_ref[...] = acc + b_ref[...]


def prepare_head_params(weight, bias):
    """One-time prep of the static nn.Linear params.

    weight: [C, H] (PyTorch nn.Linear layout), bias: [C].
    Returns weight padded to [C8, H] bf16 (C8 = round_up(C, 8): sublane-dense
    class rows, H stays on the lane axis -> compact HBM/VMEM footprint) and
    bias [1, C8] f32.
    """
    C, H = weight.shape
    C8 = _round_up(C, _SUBLANE)
    w = jnp.zeros((C8, H), dtype=jnp.bfloat16)
    w = w.at[:C, :].set(weight.astype(jnp.bfloat16))
    b = jnp.zeros((1, C8), dtype=jnp.float32)
    b = b.at[:, :C].set(bias.astype(jnp.float32))
    return w, b


@functools.partial(jax.jit, static_argnames=("n_classes",))
def sentiment_head(pooled_hidden, weight_pad, bias_pad, *, n_classes):
    """pooled_hidden: [B, H] f32, weight_pad: [C8, H] bf16, bias_pad: [1, C8] f32
    -> logits [B, n_classes] f32."""
    B, H = pooled_hidden.shape
    C8, Hw = weight_pad.shape
    assert H == Hw and bias_pad.shape == (1, C8) and n_classes <= C8

    # Small/medium batch: single full-array block (grid=(1,), no per-step
    # pipeline overhead, blocks equal full dims so no (8,128) constraint).
    # Large-batch serving: 1-D "parallel" grid over batch so both v7x
    # TensorCores are used and the activation DMA double-buffers; the weight /
    # bias index_maps are constant so they stay resident in VMEM.
    bm = B if B <= _BATCH_TILE else _BATCH_TILE
    grid = (pl.cdiv(B, bm),)

    cost = pl.CostEstimate(
        flops=2 * B * H * n_classes,                       # true C, not padded
        transcendentals=0,
        bytes_accessed=B * H * 4 + C8 * H * 2 + C8 * 4 + B * C8 * 4,
    )

    logits_pad = pl.pallas_call(
        _head_kernel,
        out_shape=jax.ShapeDtypeStruct((B, C8), jnp.float32),
        grid=grid,
        in_specs=[
            pl.BlockSpec((bm, H), lambda i: (i, 0)),       # activation (f32)
            pl.BlockSpec((C8, H), lambda i: (0, 0)),       # weight (resident)
            pl.BlockSpec((1, C8), lambda i: (0, 0)),       # bias   (resident)
        ],
        out_specs=pl.BlockSpec((bm, C8), lambda i: (i, 0)),
        compiler_params=pltpu.CompilerParams(
            dimension_semantics=("parallel",)),
        cost_estimate=cost,
    )(pooled_hidden, weight_pad, bias_pad)

    # Strip class padding outside the kernel (rows are exact: no batch pad).
    return logits_pad[:, :n_classes]


if __name__ == "__main__":
    # Small, deterministic synthetic setup consistent with the module:
    #   hidden_size (BERT) -> 32 (scaled down), n_classes -> 4, batch -> 2.
    B, H, C = 2, 32, 4

    key = jax.random.PRNGKey(0)
    k_hidden, k_w, k_b = jax.random.split(key, 3)

    # Stand-in for BertModel's pooled output (encoder itself not reproduced).
    pooled_hidden = jax.random.normal(k_hidden, (B, H), dtype=jnp.float32)

    # Deterministic nn.Linear-style init (uniform in +/- 1/sqrt(H)).
    bound = 1.0 / jnp.sqrt(jnp.float32(H))
    weight = jax.random.uniform(k_w, (C, H), dtype=jnp.float32,
                                minval=-bound, maxval=bound)   # PyTorch [C, H]
    bias = jax.random.uniform(k_b, (C,), dtype=jnp.float32,
                              minval=-bound, maxval=bound)

    w_pad, b_pad = prepare_head_params(weight, bias)

    logits = sentiment_head(pooled_hidden, w_pad, b_pad, n_classes=C)
    logits = jax.block_until_ready(logits)
    assert logits.shape == (B, C)

    # Reference 1: same bf16-input / f32-accum precision as the kernel.
    ref_bf16 = (pooled_hidden.astype(jnp.bfloat16).astype(jnp.float32)
                @ weight.astype(jnp.bfloat16).astype(jnp.float32).T) + bias
    assert jnp.allclose(logits, ref_bf16, atol=1e-3, rtol=1e-3)

    # Reference 2: pure f32 PyTorch-equivalent math (eval-mode dropout ==
    # identity); agrees within bf16 rounding error.
    ref_f32 = pooled_hidden @ weight.T + bias
    assert jnp.allclose(logits, ref_f32, atol=3e-2, rtol=3e-2)

    print("KERNEL_OK")
</pallas_src>

<mosaic_0001>
module attributes {stable_mosaic.version = 11 : i64} {
  func.func @_head_kernel(%arg0: i32, %arg1: memref<2x32xf32, #tpu.memory_space<vmem>>, %arg2: memref<8x32xbf16, #tpu.memory_space<vmem>>, %arg3: memref<1x8xf32, #tpu.memory_space<vmem>>, %arg4: memref<2x8xf32, #tpu.memory_space<vmem>>) attributes {dimension_semantics = [#tpu.dimension_semantics<parallel>], iteration_bounds = array<i64: 1>, scalar_prefetch = 0 : i64, scratch_operands = 0 : i64, tpu.core_type = #tpu.core_type<tc>, window_params = [{transform_indices = @transform_0, window_bounds = array<i64: 2, 32>}, {pipeline_mode = #tpu.pipeline_mode<synchronous>, transform_indices = @transform_1, window_bounds = array<i64: 8, 32>}, {pipeline_mode = #tpu.pipeline_mode<synchronous>, transform_indices = @transform_2, window_bounds = array<i64: 1, 8>}, {transform_indices = @transform_3, window_bounds = array<i64: 2, 8>}]} {
    %c0 = arith.constant 0 : index
    %c0_0 = arith.constant 0 : index
    %0 = vector.load %arg1[%c0, %c0_0] : memref<2x32xf32, #tpu.memory_space<vmem>>, vector<2x32xf32>
    %1 = arith.truncf %0 : vector<2x32xf32> to vector<2x32xbf16>
    %c0_1 = arith.constant 0 : index
    %c0_2 = arith.constant 0 : index
    %2 = vector.load %arg2[%c0_1, %c0_2] : memref<8x32xbf16, #tpu.memory_space<vmem>>, vector<8x32xbf16>
    %cst = arith.constant dense<0.000000e+00> : vector<2x8xf32>
    %3 = tpu.matmul %1, %2, %cst {dimension_numbers = #tpu.dot_dimension_numbers<[1], [1], [0], [0], [0, 0, 1, 0], [], []>} : vector<2x32xbf16>, vector<8x32xbf16>, vector<2x8xf32> -> vector<2x8xf32>
    %c0_3 = arith.constant 0 : index
    %c0_4 = arith.constant 0 : index
    %4 = vector.load %arg3[%c0_3, %c0_4] : memref<1x8xf32, #tpu.memory_space<vmem>>, vector<1x8xf32>
    %5 = vector.broadcast %4 : vector<1x8xf32> to vector<2x8xf32>
    %6 = arith.addf %3, %5 : vector<2x8xf32>
    %c0_5 = arith.constant 0 : index
    %c0_6 = arith.constant 0 : index
    %7 = vector.load %arg4[%c0_5, %c0_6] : memref<2x8xf32, #tpu.memory_space<vmem>>, vector<2x8xf32>
    tpu.vector_store %arg4[%c0_5, %c0_6], %6 {strides = array<i32>} : memref<2x8xf32, #tpu.memory_space<vmem>>, vector<2x8xf32>,
    return
  }
  func.func @transform_0(%arg0: i32) -> (i32, i32) {
    %c0_i32 = arith.constant 0 : i32
    %c0_i32_0 = arith.constant 0 : i32
    return %arg0, %c0_i32 : i32, i32
  }
  func.func @transform_1(%arg0: i32) -> (i32, i32) {
    %c0_i32 = arith.constant 0 : i32
    %c0_i32_0 = arith.constant 0 : i32
    %c0_i32_1 = arith.constant 0 : i32
    return %c0_i32, %c0_i32_0 : i32, i32
  }
  func.func @transform_2(%arg0: i32) -> (i32, i32) {
    %c0_i32 = arith.constant 0 : i32
    %c0_i32_0 = arith.constant 0 : i32
    %c0_i32_1 = arith.constant 0 : i32
    return %c0_i32, %c0_i32_0 : i32, i32
  }
  func.func @transform_3(%arg0: i32) -> (i32, i32) {
    %c0_i32 = arith.constant 0 : i32
    %c0_i32_0 = arith.constant 0 : i32
    return %arg0, %c0_i32 : i32, i32
  }
}

</mosaic_0001>

<bundles_post_ra>
// kernel: sentiment_head.1
= control target key start
LH: loop header
LB: loop body
LE: loop exit
PB: predicated region body
PF: predicated region fallthrough
CT: control target
= control target key end

     0   :  { %8 = vsyncpa [#allocation3], 0  ;;  %s209_s0 = inlined_call_operand.hbm [shape: f32[2,32], index: 0, kind: input, shape index: {}]   ;;  %s210_s1 = inlined_call_operand.hbm [shape: bf16[8,32], index: 1, kind: input, shape index: {}]   ;;  %s211_s2 = inlined_call_operand.vmem [shape: f32[1,8], index: 2, kind: input, shape index: {}]   ;;  %s212_s3 = inlined_call_operand.hbm [shape: f32[2,8], index: 3, kind: output, shape index: {}]  }
   0x1   :  { %9 = vsyncpa [#allocation6], 0 }
   0x2   :  { %10 = vsyncpa [#allocation4], 0  ;;  %s16_s14 = sshll.u32 %s209_s0, 4  ;;  %s174_s15 = smov [#allocation2]   ;;  %s17_s14 = int_to_ptr.hbm [resolvable:$true] %s16_s14 }
   0x3   :  { %s18_s16 = sshll.u32 %s174_s15, 4  ;;  %s27_s19 = sshll.u32 %s210_s1, 4  ;;  %s19_s16 = int_to_ptr.vmem [resolvable:$true] %s18_s16  ;;  %s28_s19 = int_to_ptr.hbm [resolvable:$true] %s27_s19 }
   0x4   :  { %21 = dma.hbm_to_vmem [thread:$0]  %s17_s14, 32, %s19_s16, [#allocation3]  }
   0x5   :  { %s175_s20 = smov [#allocation5]  }
   0x6   :  { %s29_s21 = sshll.u32 %s175_s20, 4  ;;  %s30_s21 = int_to_ptr.vmem [resolvable:$true] %s29_s21 }
   0x7   :  { %32 = dma.hbm_to_vmem [thread:$0]  %s28_s19, 64, %s30_s21, [#allocation6]  }
   0x8   :  { %168 = dma.done.wait [#allocation3], 32  }
   0x9   :  { %169 = vsyncadd [#allocation3], 4294967264 }
   0xa   :  { %170 = dma.done.wait [#allocation6], 64  }
   0xb   :  { %171 = vsyncadd [#allocation6], 4294967232  ;;  %vm51_vm0 = vcmask 261120   ;;  %v46_v0 = vld [vmem:[#allocation5] sm:$0xf]  ;;  %s176_s1 = smov [#allocation7]  }
   0xc   :  { %v56_v1 = vsel %vm51_vm0, %v46_v0, 0  ;;  %v44_v2 = vld [vmem:[#allocation2] sm:$0x3]  ;;  %s78_s23 = sshll.u32 %s176_s1, 4  ;;  %s80_s26 = sshll.u32 %s212_s3, 4  ;;  %vm71_vm1 = vcmask 58368   ;;  %s79_s23 = int_to_ptr.vmem [resolvable:$true] %s78_s23  ;;  %s81_s26 = int_to_ptr.hbm [resolvable:$true] %s80_s26 }
   0xd   :  { %65 = vmatpush.bf16.xpose.msra.mxu0 %v56_v1  ;;  %v45_v3 = vpack.c.bf16 %v44_v2, %v44_v2  ;;  %v95_v4 = vld [vmem:[%s211_s2] ss:$0 sm:$0xff] }
  0x14   :  { %91 = vmatmul.msk.bf16.vlgmr.msra.gmra.mxu0 %vm51_vm0, %v45_v3 }
  0x91   :  { %v67_v5 = vpop.f32.mrf.mxu0 }
  0x92   :  { %v68_v6 = vadd.f32 %v95_v4, %v67_v5 }
  0x94   :  { %72 = vst.msk [vmem:[#allocation7] sm:$0x3] %vm71_vm1, %v68_v6 }
  0x95   :  { %83 = dma.vmem_to_hbm [thread:$0]  %s79_s23, 32, %s81_s26, [#allocation4]  }
  0x99   :  { %v69_v7 = vpop.f32.mrf.mxu0 }
  0x9a   :  { %172 = dma.done.wait [#allocation4], 32  }
  0x9b   :  { %173 = vsyncadd [#allocation4], 4294967264 }
  0x9c   :  { %88 = vsyncpa [#allocation3], 1 }
  0x9d   :  { %89 = vsyncpa [#allocation6], 1 }
  0x9e   :  { %90 = vsyncpa [#allocation4], 1 }

</bundles_post_ra>
